<compile_context>
chip_gen: v7x
topology: tpu7x:2x2x1
jax: 0.10.0
libtpu: 0.0.40
codegen_flags: <defaults>
</compile_context>

<pallas_src>
import numpy as np
import jax
import jax.numpy as jnp
from jax.experimental import pallas as pl
from jax.experimental.pallas import tpu as pltpu

LANE = 128


def _round_up(x, m):
    return ((x + m - 1) // m) * m


# ----------------------------------------------------------------------------
# Pallas kernel: dense(2H->H) + tanh + out_proj(H->128-padded), fused.
# ----------------------------------------------------------------------------
def _head_kernel(x_ref,            # VMEM (tp, 2H)       bf16 or f32
                 w1_ref, b1_ref,   # VMEM (2H, H), (1, H)
                 w2_ref, b2_ref,   # VMEM (H, 128), (1, 128)  (zero-padded cols)
                 out_ref):         # VMEM (tp, 128)      f32
    # dense: MXU with f32 accumulation; bias-add (VPU) + tanh (EUP) in f32.
    h = jnp.dot(x_ref[...], w1_ref[...], preferred_element_type=jnp.float32)
    h = jnp.tanh(h + b1_ref[...])
    # out_proj: N zero-padded to 128 lanes -> unmasked lane-dense stores.
    o = jnp.dot(h.astype(w2_ref.dtype), w2_ref[...],
                preferred_element_type=jnp.float32) + b2_ref[...]
    out_ref[...] = o.astype(out_ref.dtype)


# ----------------------------------------------------------------------------
# One-time weight preparation (hoisted out of the per-call forward path).
# Linear weights are stored pre-transposed as (in_features, out_features).
# ----------------------------------------------------------------------------
def prepare_head_params(w_dense, b_dense, w_out, b_out, *, use_bf16=True):
    H = w_dense.shape[1]
    n_cls = w_out.shape[1]          # = 2
    wdt = jnp.bfloat16 if use_bf16 else jnp.float32
    w1 = w_dense.astype(wdt)                                   # (2H, H)
    b1 = b_dense.reshape(1, H).astype(jnp.float32)             # (1, H)
    w2p = jnp.zeros((H, LANE), wdt).at[:, :n_cls].set(w_out.astype(wdt))
    b2p = jnp.zeros((1, LANE), jnp.float32).at[:, :n_cls].set(
        b_out.reshape(1, n_cls).astype(jnp.float32))
    return {"w1": w1, "b1": b1, "w2p": w2p, "b2p": b2p, "n_cls": n_cls}


def _choose_row_tile(P, row_block, bf16):
    sub = 16 if bf16 else 8            # bf16 packs 16 rows per sublane tile
    target = max(1, pl.cdiv(P, 2))     # >= 2 row blocks when P allows (v7x TCs)
    tp = min(row_block, _round_up(target, sub))
    if P >= 2 * 128:
        tp = max(128, (tp // 128) * 128)   # MXU-friendly M for larger batches
    return tp


# ----------------------------------------------------------------------------
# Forward wrapper: layout-only CLS gather / pair reshape + fused pallas_call.
# ----------------------------------------------------------------------------
def roberta_classification_head(features, params, *, row_block=512):
    B, L, H = features.shape
    assert B % 2 == 0, "examples are paired; batch must be even"
    P = B // 2
    w1, b1, w2p, b2p = params["w1"], params["b1"], params["w2p"], params["b2p"]
    n_cls = params["n_cls"]
    bf16 = w1.dtype == jnp.bfloat16

    # Layout-only ops stay in plain JAX; the kernel never DMAs the (B, L, H)
    # hidden-state block. Dropout is identity at inference.
    # TODO(synk): fuse the CLS gather into the kernel (stride-2 sublane slices)
    # if activation bytes ever rival weight bytes at very large B.
    x = features[:, 0, :].reshape(P, 2 * H).astype(w1.dtype)

    tp = _choose_row_tile(P, row_block, bf16)
    grid = (pl.cdiv(P, tp),)           # ragged last block handled by Pallas

    out = pl.pallas_call(
        _head_kernel,
        out_shape=jax.ShapeDtypeStruct((P, LANE), jnp.float32),
        grid_spec=pltpu.PrefetchScalarGridSpec(
            num_scalar_prefetch=0,
            grid=grid,
            in_specs=[
                pl.BlockSpec((tp, 2 * H), lambda i: (i, 0)),        # activations
                # Grid-invariant weights/biases: single-buffer them.
                pl.BlockSpec((2 * H, H), lambda i: (0, 0),
                             pipeline_mode=pl.Buffered(1)),         # dense.weight^T
                pl.BlockSpec((1, H), lambda i: (0, 0),
                             pipeline_mode=pl.Buffered(1)),         # dense.bias
                pl.BlockSpec((H, LANE), lambda i: (0, 0),
                             pipeline_mode=pl.Buffered(1)),         # out_proj.weight^T (padded)
                pl.BlockSpec((1, LANE), lambda i: (0, 0),
                             pipeline_mode=pl.Buffered(1)),         # out_proj.bias (padded)
            ],
            out_specs=pl.BlockSpec((tp, LANE), lambda i: (i, 0)),
        ),
        compiler_params=pltpu.CompilerParams(
            dimension_semantics=("parallel",),     # shard row blocks across v7x TCs
            vmem_limit_bytes=64 * 1024 * 1024,     # v5e default (16 MiB) too small at big H
        ),
    )(x, w1, b1, w2p, b2p)

    # TODO(synk): add a K-blocked grid axis over the 2H contraction (f32 acc
    # scratch) if H grows past ~2048 so W1 still fits v7x's 64 MiB VMEM.
    return out[:, :n_cls]             # strip the lane padding of out_proj


# ----------------------------------------------------------------------------
if __name__ == "__main__":
    key = jax.random.PRNGKey(0)
    k1, k2, k3, k4, k5 = jax.random.split(key, 5)

    B, L, H = 4, 8, 32          # 2 paired examples
    features = jax.random.normal(k1, (B, L, H), jnp.float32)
    # Linear weights stored pre-transposed as (in_features, out_features).
    w_dense = jax.random.normal(k2, (2 * H, H), jnp.float32) * 0.05
    b_dense = jax.random.normal(k3, (H,), jnp.float32) * 0.01
    w_out = jax.random.normal(k4, (H, 2), jnp.float32) * 0.05
    b_out = jax.random.normal(k5, (2,), jnp.float32) * 0.01

    # Pure-JAX reference of the module forward (dropout = identity at eval).
    ref = jnp.tanh(features[:, 0, :].reshape(B // 2, 2 * H) @ w_dense
                   + b_dense) @ w_out + b_out

    # Default path: bf16 weights/activations, f32 MXU accumulation.
    params_bf16 = prepare_head_params(w_dense, b_dense, w_out, b_out)
    logits = roberta_classification_head(features, params_bf16)
    jax.block_until_ready(logits)
    assert logits.shape == (B // 2, 2)
    assert np.allclose(np.asarray(logits), np.asarray(ref), atol=3e-2, rtol=3e-2)

    # f32 path with tight tolerance + a ragged row count (P=5 -> masked tail block).
    B2, L2, H2 = 10, 8, 64
    feats2 = jax.random.normal(k1, (B2, L2, H2), jnp.float32)
    w_d2 = jax.random.normal(k2, (2 * H2, H2), jnp.float32) * 0.05
    b_d2 = jax.random.normal(k3, (H2,), jnp.float32) * 0.01
    w_o2 = jax.random.normal(k4, (H2, 2), jnp.float32) * 0.05
    b_o2 = jax.random.normal(k5, (2,), jnp.float32) * 0.01

    params_f32 = prepare_head_params(w_d2, b_d2, w_o2, b_o2, use_bf16=False)
    logits2 = roberta_classification_head(feats2, params_f32)
    jax.block_until_ready(logits2)
    ref2 = jnp.tanh(feats2[:, 0, :].reshape(B2 // 2, 2 * H2) @ w_d2
                    + b_d2) @ w_o2 + b_o2
    assert logits2.shape == (B2 // 2, 2)
    assert np.allclose(np.asarray(logits2), np.asarray(ref2), atol=1e-5, rtol=1e-5)

    print("KERNEL_OK")
</pallas_src>

<mosaic_0001>
module attributes {stable_mosaic.version = 11 : i64} {
  func.func @_head_kernel(%arg0: i32, %arg1: memref<16x64xbf16, #tpu.memory_space<vmem>>, %arg2: memref<64x32xbf16, #tpu.memory_space<vmem>>, %arg3: memref<1x32xf32, #tpu.memory_space<vmem>>, %arg4: memref<32x128xbf16, #tpu.memory_space<vmem>>, %arg5: memref<1x128xf32, #tpu.memory_space<vmem>>, %arg6: memref<16x128xf32, #tpu.memory_space<vmem>>) attributes {dimension_semantics = [#tpu.dimension_semantics<parallel>], iteration_bounds = array<i64: 1>, scalar_prefetch = 0 : i64, scratch_operands = 0 : i64, tpu.core_type = #tpu.core_type<tc>, window_params = [{transform_indices = @transform_0, window_bounds = array<i64: 16, 64>}, {pipeline_mode = #tpu.pipeline_mode<synchronous>, transform_indices = @transform_1, window_bounds = array<i64: 64, 32>}, {pipeline_mode = #tpu.pipeline_mode<synchronous>, transform_indices = @transform_2, window_bounds = array<i64: 1, 32>}, {pipeline_mode = #tpu.pipeline_mode<synchronous>, transform_indices = @transform_3, window_bounds = array<i64: 32, 128>}, {pipeline_mode = #tpu.pipeline_mode<synchronous>, transform_indices = @transform_4, window_bounds = array<i64: 1, 128>}, {transform_indices = @transform_5, window_bounds = array<i64: 16, 128>}]} {
    %c0 = arith.constant 0 : index
    %c0_0 = arith.constant 0 : index
    %0 = vector.load %arg1[%c0, %c0_0] : memref<16x64xbf16, #tpu.memory_space<vmem>>, vector<16x64xbf16>
    %c0_1 = arith.constant 0 : index
    %c0_2 = arith.constant 0 : index
    %1 = vector.load %arg2[%c0_1, %c0_2] : memref<64x32xbf16, #tpu.memory_space<vmem>>, vector<64x32xbf16>
    %cst = arith.constant dense<0.000000e+00> : vector<16x32xf32>
    %2 = tpu.matmul %0, %1, %cst {dimension_numbers = #tpu.dot_dimension_numbers<[1], [0], [0], [1], [0, 0, 1, 1], [], []>} : vector<16x64xbf16>, vector<64x32xbf16>, vector<16x32xf32> -> vector<16x32xf32>
    %c0_3 = arith.constant 0 : index
    %c0_4 = arith.constant 0 : index
    %3 = vector.load %arg3[%c0_3, %c0_4] : memref<1x32xf32, #tpu.memory_space<vmem>>, vector<1x32xf32>
    %4 = vector.broadcast %3 : vector<1x32xf32> to vector<16x32xf32>
    %5 = arith.addf %2, %4 : vector<16x32xf32>
    %6 = math.tanh %5 : vector<16x32xf32>
    %7 = arith.truncf %6 : vector<16x32xf32> to vector<16x32xbf16>
    %c0_5 = arith.constant 0 : index
    %c0_6 = arith.constant 0 : index
    %8 = vector.load %arg4[%c0_5, %c0_6] : memref<32x128xbf16, #tpu.memory_space<vmem>>, vector<32x128xbf16>
    %cst_7 = arith.constant dense<0.000000e+00> : vector<16x128xf32>
    %9 = tpu.matmul %7, %8, %cst_7 {dimension_numbers = #tpu.dot_dimension_numbers<[1], [0], [0], [1], [0, 0, 1, 1], [], []>} : vector<16x32xbf16>, vector<32x128xbf16>, vector<16x128xf32> -> vector<16x128xf32>
    %c0_8 = arith.constant 0 : index
    %c0_9 = arith.constant 0 : index
    %10 = vector.load %arg5[%c0_8, %c0_9] : memref<1x128xf32, #tpu.memory_space<vmem>>, vector<1x128xf32>
    %11 = vector.broadcast %10 : vector<1x128xf32> to vector<16x128xf32>
    %12 = arith.addf %9, %11 : vector<16x128xf32>
    %c0_10 = arith.constant 0 : index
    %c0_11 = arith.constant 0 : index
    %13 = vector.load %arg6[%c0_10, %c0_11] : memref<16x128xf32, #tpu.memory_space<vmem>>, vector<16x128xf32>
    tpu.vector_store %arg6[%c0_10, %c0_11], %12 {strides = array<i32>} : memref<16x128xf32, #tpu.memory_space<vmem>>, vector<16x128xf32>,
    return
  }
  func.func @transform_0(%arg0: i32) -> (i32, i32) {
    %c0_i32 = arith.constant 0 : i32
    %c0_i32_0 = arith.constant 0 : i32
    return %arg0, %c0_i32 : i32, i32
  }
  func.func @transform_1(%arg0: i32) -> (i32, i32) {
    %c0_i32 = arith.constant 0 : i32
    %c0_i32_0 = arith.constant 0 : i32
    %c0_i32_1 = arith.constant 0 : i32
    return %c0_i32, %c0_i32_0 : i32, i32
  }
  func.func @transform_2(%arg0: i32) -> (i32, i32) {
    %c0_i32 = arith.constant 0 : i32
    %c0_i32_0 = arith.constant 0 : i32
    %c0_i32_1 = arith.constant 0 : i32
    return %c0_i32, %c0_i32_0 : i32, i32
  }
  func.func @transform_3(%arg0: i32) -> (i32, i32) {
    %c0_i32 = arith.constant 0 : i32
    %c0_i32_0 = arith.constant 0 : i32
    %c0_i32_1 = arith.constant 0 : i32
    return %c0_i32, %c0_i32_0 : i32, i32
  }
  func.func @transform_4(%arg0: i32) -> (i32, i32) {
    %c0_i32 = arith.constant 0 : i32
    %c0_i32_0 = arith.constant 0 : i32
    %c0_i32_1 = arith.constant 0 : i32
    return %c0_i32, %c0_i32_0 : i32, i32
  }
  func.func @transform_5(%arg0: i32) -> (i32, i32) {
    %c0_i32 = arith.constant 0 : i32
    %c0_i32_0 = arith.constant 0 : i32
    return %arg0, %c0_i32 : i32, i32
  }
}

</mosaic_0001>

<bundles_post_ra>
// kernel: tpu_custom_call.1
= control target key start
LH: loop header
LB: loop body
LE: loop exit
PB: predicated region body
PF: predicated region fallthrough
CT: control target
= control target key end

     0   :  { %10 = vsyncpa [#allocation3], 0  ;;  %s647_s0 = inlined_call_operand.hbm [shape: bf16[2,64], index: 0, kind: input, shape index: {}]   ;;  %s648_s1 = inlined_call_operand.hbm [shape: bf16[64,32], index: 1, kind: input, shape index: {}]   ;;  %s649_s2 = inlined_call_operand.hbm [shape: f32[1,32], index: 2, kind: input, shape index: {}]   ;;  %s650_s3 = inlined_call_operand.hbm [shape: bf16[32,128], index: 3, kind: input, shape index: {}]   ;;  %s651_s4 = inlined_call_operand.hbm [shape: f32[1,128], index: 4, kind: input, shape index: {}]   ;;  %s652_s5 = inlined_call_operand.hbm [shape: f32[2,128], index: 5, kind: output, shape index: {}]  }
   0x1   :  { %11 = vsyncpa [#allocation6], 0 }
   0x2   :  { %12 = vsyncpa [#allocation9], 0 }
   0x3   :  { %13 = vsyncpa [#allocation4], 0 }
   0x4   :  { %18 = vsyncadd [#allocation3], 112  ;;  %s530_s18 = smov [#allocation5]   ;;  %s390_s22 = scalar_lea.hbm %s648_s1, 512 }
   0x5   :  { %s31_s19 = sshll.u32 %s530_s18, 4  ;;  %p391_p0 = scmp.ne.s32.totalorder %s648_s1, %s390_s22  ;;  %s32_s19 = int_to_ptr.vmem [resolvable:$true] %s31_s19 }
   0x6   :  { %p394_p1 = scmp.lt.u32.totalorder %s390_s22, %s648_s1 }
   0x8   :  { %p396_p2 = pnand %p394_p1, %p391_p0 }
   0xa   :  { %399 = shalt.err (!%p396_p2)
}
   0xb   :  { %s400_s27 = scalar_lea.vmem %s32_s19, 512  ;;  %p405_p4 = scmp.lt.s32.totalorder %s32_s19, %s32_s19 }
   0xc   :  { %p401_p3 = scmp.ne.s32.totalorder %s32_s19, %s400_s27  ;;  %p406_p5 = scmp.lt.s32.totalorder %s400_s27, %s400_s27 }
   0xe   :  { %p407_p6 = por %p406_p5, %p405_p4 }
  0x10   :  { %p408_p7 = pnand %p407_p6, %p401_p3 }
  0x12   :  { %411 = shalt.err (!%p408_p7)
}
  0x13   :  { %s531_s28 = smov 64   ;;  %s532_s29 = smov 4  }
  0x14   :  { %37 = dma.hbm_to_vmem [thread:$0]  %s648_s1, 512, %s32_s19, [#allocation6], %s531_s28, %s531_s28, %s532_s29  }
  0x15   :  { %s533_s7 = smov [#allocation8]   ;;  %s534_s9 = smov [#allocation2]  }
  0x16   :  { %s53_s8 = sshll.u32 %s533_s7, 4  ;;  %s19_s10 = sshll.u32 %s534_s9, 4  ;;  %s54_s8 = int_to_ptr.vmem [resolvable:$true] %s53_s8  ;;  %s20_s10 = int_to_ptr.vmem [resolvable:$true] %s19_s10 }
  0x17   :  { %s412_s13 = scalar_lea.hbm %s650_s3, 256 }
  0x18   :  { %p413_p8 = scmp.ne.s32.totalorder %s650_s3, %s412_s13  ;;  %p416_p9 = scmp.lt.u32.totalorder %s412_s13, %s650_s3 }
  0x1a   :  { %p418_p10 = pnand %p416_p9, %p413_p8 }
  0x1c   :  { %421 = shalt.err (!%p418_p10)
}
  0x1d   :  { %s422_s1 = scalar_lea.vmem %s54_s8, 256  ;;  %p427_p12 = scmp.lt.s32.totalorder %s54_s8, %s54_s8 }
  0x1e   :  { %p423_p11 = scmp.ne.s32.totalorder %s54_s8, %s422_s1  ;;  %p428_p13 = scmp.lt.s32.totalorder %s422_s1, %s422_s1 }
  0x20   :  { %p429_p0 = por %p428_p13, %p427_p12 }
  0x22   :  { %p430_p1 = pnand %p429_p0, %p423_p11 }
  0x24   :  { %433 = shalt.err (!%p430_p1)
}
  0x25   :  { %59 = dma.hbm_to_vmem [thread:$0]  %s650_s3, 256, %s54_s8, [#allocation9], %s531_s28, %s531_s28, %s532_s29  }
  0x26   :  { %s434_s22 = scalar_lea.hbm %s647_s0, 16 }
  0x27   :  { %p435_p2 = scmp.ne.s32.totalorder %s647_s0, %s434_s22  ;;  %p438_p3 = scmp.lt.u32.totalorder %s434_s22, %s647_s0 }
  0x29   :  { %p440_p4 = pnand %p438_p3, %p435_p2 }
  0x2b   :  { %443 = shalt.err (!%p440_p4)
}
  0x2c   :  { %s444_s27 = scalar_lea.vmem %s20_s10, 16  ;;  %s448_s30 = scalar_lea.vmem %s20_s10, 128 }
  0x2d   :  { %p445_p5 = scmp.ne.s32.totalorder %s20_s10, %s444_s27  ;;  %p449_p6 = scmp.lt.s32.totalorder %s20_s10, %s20_s10 }
  0x2e   :  { %p450_p7 = scmp.lt.s32.totalorder %s448_s30, %s444_s27 }
  0x30   :  { %p451_p8 = por %p450_p7, %p449_p6 }
  0x32   :  { %p452_p9 = pnand %p451_p8, %p445_p5 }
  0x34   :  { %455 = shalt.err (!%p452_p9)
}
  0x35   :  { %s535_s3 = smov 16   ;;  %s536_s28 = smov 1  }
  0x36   :  { %25 = dma.hbm_to_vmem [thread:$0]  %s647_s0, 16, %s20_s10, [#allocation3], %s535_s3, %s535_s3, %s536_s28  }
  0x37   :  { %s537_s7 = smov [#allocation7]   ;;  %s538_s9 = smov [#allocation10]  }
  0x38   :  { %s44_s8 = sshll.u32 %s537_s7, 4  ;;  %s66_s11 = sshll.u32 %s538_s9, 4  ;;  %s45_s8 = int_to_ptr.vmem [resolvable:$true] %s44_s8  ;;  %s67_s11 = int_to_ptr.vmem [resolvable:$true] %s66_s11 }
  0x39   :  { %s456_s14 = scalar_lea.hbm %s649_s2, 16 }
  0x3a   :  { %p457_p10 = scmp.ne.s32.totalorder %s649_s2, %s456_s14  ;;  %p460_p11 = scmp.lt.u32.totalorder %s456_s14, %s649_s2 }
  0x3c   :  { %p462_p12 = pnand %p460_p11, %p457_p10 }
  0x3e   :  { %465 = shalt.err (!%p462_p12)
}
  0x3f   :  { %s466_s0 = scalar_lea.vmem %s45_s8, 16  ;;  %s470_s10 = scalar_lea.vmem %s45_s8, 32 }
  0x40   :  { %p467_p13 = scmp.ne.s32.totalorder %s45_s8, %s466_s0  ;;  %p471_p0 = scmp.lt.s32.totalorder %s45_s8, %s45_s8 }
  0x41   :  { %p472_p1 = scmp.lt.s32.totalorder %s470_s10, %s466_s0 }
  0x43   :  { %p473_p2 = por %p472_p1, %p471_p0 }
  0x45   :  { %p474_p3 = pnand %p473_p2, %p467_p13 }
  0x47   :  { %477 = shalt.err (!%p474_p3)
}
  0x48   :  { %47 = dma.hbm_to_vmem [thread:$0]  %s649_s2, 16, %s45_s8, [#allocation6]  }
  0x49   :  { %s478_s22 = scalar_lea.hbm %s651_s4, 16 }
  0x4a   :  { %p479_p4 = scmp.ne.s32.totalorder %s651_s4, %s478_s22  ;;  %p482_p5 = scmp.lt.u32.totalorder %s478_s22, %s651_s4 }
  0x4c   :  { %p484_p6 = pnand %p482_p5, %p479_p4 }
  0x4e   :  { %487 = shalt.err (!%p484_p6)
}
  0x4f   :  { %s488_s27 = scalar_lea.vmem %s67_s11, 16  ;;  %s492_s30 = scalar_lea.vmem %s67_s11, 32 }
  0x50   :  { %p489_p7 = scmp.ne.s32.totalorder %s67_s11, %s488_s27  ;;  %p493_p8 = scmp.lt.s32.totalorder %s67_s11, %s67_s11 }
  0x51   :  { %p494_p9 = scmp.lt.s32.totalorder %s492_s30, %s488_s27 }
  0x53   :  { %p495_p10 = por %p494_p9, %p493_p8 }
  0x55   :  { %p496_p11 = pnand %p495_p10, %p489_p7 }
  0x57   :  { %499 = shalt.err (!%p496_p11)
}
  0x58   :  { %69 = dma.hbm_to_vmem [thread:$0]  %s651_s4, 16, %s67_s11, [#allocation9]  }
  0x59   :  { %522 = dma.done.wait [#allocation3], 128  }
  0x5a   :  { %523 = vsyncadd [#allocation3], 4294967168 }
  0x5b   :  { %524 = dma.done.wait [#allocation6], 528  }
  0x5c   :  { %525 = vsyncadd [#allocation6], 4294966768 }
  0x5d   :  { %526 = dma.done.wait [#allocation9], 272  }
  0x5e   :  { %527 = vsyncadd [#allocation9], 4294967024  ;;  %v539_v0 = vmov 0.0   ;;  %vm540_vm0 = vmmov 0   ;;  %v541_v1 = vmov 1966171168   ;;  %v124_v3 = vlaneseq }
  0x5f   :  { %345 = vmatprep.subr.bf16.mxu0 %v539_v0  ;;  %353 = vmatprep.mubr.msk.bf16.mxu0 %vm540_vm0, %v539_v0  ;;  %v122_v2 = vunpack.c.l.s4 %v541_v1  ;;  %v380_v6 = vld [vmem:[#allocation5] sm:$0xff]   ;;  %v381_v7 = vld [vmem:[#allocation5 + $0x8] sm:$0xff]   ;;  %v86_v9 = vld [vmem:[#allocation2] sm:$0x1]  ;;  %vm190_vm1 = vcmask 523264   ;;  %vm261_vm2 = vcmask 261120  }
  0x60   :  { %357 = vmatprep.subr.bf16.mxu1 %v539_v0  ;;  %361 = vmatprep.mubr.msk.bf16.mxu1 %vm540_vm0, %v539_v0  ;;  %v125_v5 = vshrl.u32 %v124_v3, 7  ;;  %v87_v10 = vld [vmem:[#allocation2 + $0x1] sm:$0x1]  ;;  %v88_v11 = vld [vmem:[#allocation2 + $0x2] sm:$0x1]  ;;  %v382_v16 = vld [vmem:[#allocation5 + $0x10] sm:$0xff]  }
  0x61   :  { %v123_v4 = vunpack.c.0.s8 %v122_v2  ;;  %346 = vmatpush3.bf16.msra.mxu0 %v380_v6  ;;  %v89_v12 = vld [vmem:[#allocation2 + $0x3] sm:$0x1]  ;;  %v90_v13 = vld [vmem:[#allocation2 + $0x4] sm:$0x1]  ;;  %v91_v14 = vld [vmem:[#allocation2 + $0x5] sm:$0x1]  ;;  %v117_v15 = vcombine.low %v86_v9, %v87_v10 }
  0x62   :  { %347 = vmatprep.subr.bf16.mxu0 %v539_v0  ;;  %v92_v17 = vld [vmem:[#allocation2 + $0x6] sm:$0x1]  ;;  %v93_v18 = vld [vmem:[#allocation2 + $0x7] sm:$0x1]  ;;  %v118_v19 = vcombine.low %v88_v11, %v89_v12  ;;  %v119_v20 = vcombine.low %v90_v13, %v91_v14  ;;  %v384_v32 = vld [vmem:[#allocation8] sm:$0xff]  }
  0x63   :  { %v126_v8 = vsub.s32 %v123_v4, %v125_v5  ;;  %v120_v21 = vcombine.low %v92_v17, %v93_v18  ;;  %v383_v26 = vld [vmem:[#allocation5 + $0x18] sm:$0xff]   ;;  %358 = vmatpush3.bf16.msra.mxu1 %v384_v32  ;;  %v385_v33 = vld [vmem:[#allocation8 + $0x8] sm:$0xff]   ;;  %v327_v34 = vld [vmem:[#allocation7] ss:$0 sm:$0xff] }
  0x64   :  { %359 = vmatprep.subr.bf16.mxu1 %v539_v0  ;;  %v333_v44 = vld [vmem:[#allocation10] ss:$0 sm:$0xff] }
  0x65   :  { %348 = vmatpush3.bf16.msra.mxu0 %v381_v7  ;;  %v127_v22 = vrot.slane %v117_v15, %v126_v8  ;;  %v134_v23 = vrot.slane %v118_v19, %v126_v8  ;;  %v141_v24 = vrot.slane %v119_v20, %v126_v8  ;;  %v148_v25 = vrot.slane %v120_v21, %v126_v8 }
  0x66   :  { %349 = vmatprep.subr.bf16.mxu0 %v539_v0 }
  0x67   :  { %v149_v27 = vcombine.low %v127_v22, %v134_v23  ;;  %v150_v28 = vcombine.low %v141_v24, %v148_v25  ;;  %360 = vmatpush3.bf16.msra.mxu1 %v385_v33 }
  0x69   :  { %350 = vmatpush3.bf16.msra.mxu0 %v382_v16  ;;  %v157_v29 = vrot.slane %v149_v27, %v126_v8  ;;  %v164_v30 = vrot.slane %v150_v28, %v126_v8 }
  0x6a   :  { %351 = vmatprep.subr.bf16.mxu0 %v539_v0 }
  0x6b   :  { %v165_v31 = vcombine.low %v157_v29, %v164_v30 }
  0x6d   :  { %352 = vmatpush3.bf16.msra.mxu0 %v383_v26 }
  0x70   :  { %354 = vmatmul.mubr.msk.bf16.vlgmr.msra.gmra.mrb[0].mxu0 %vm190_vm1, %v165_v31 }
 0x143   :  { %v228_v35 = vpop.f32.mrb[0].mxu0 }
 0x144   :  { %v229_v36 = vadd.f32 %v327_v34, %v228_v35  ;;  %v355_v37 = vpop.f32.mrb[1].mxu0 }
 0x145   :  { %v231_v38 = vpop.f32.mrb[2].mxu0 }
 0x146   :  { %v232_v39 = vadd.f32 %v327_v34, %v231_v38  ;;  %v356_v40 = vpop.f32.mrb[3].mxu0  ;;  %386 = vtanh.f32 %v229_v36 }
 0x148   :  { %388 = vtanh.f32 %v232_v39 }
 0x150   :  { %v387_v41 = vpop.eup %386 }
 0x152   :  { %v389_v42 = vpop.eup %388 }
 0x153   :  { %v237_v43 = vpack.c.bf16 %v389_v42, %v387_v41 }
 0x155   :  { %362 = vmatmul.mubr.msk.bf16.vlgmr.msra.gmra.mrb[0].mxu1 %vm261_vm2, %v237_v43 }
 0x228   :  { %v299_v45 = vpop.f32.mrb[0].mxu1 }
 0x229   :  { %v300_v46 = vadd.f32 %v333_v44, %v299_v45  ;;  %v363_v47 = vpop.f32.mrb[1].mxu1 }
 0x22a   :  { %v302_v48 = vpop.f32.mrb[2].mxu1 }
 0x22b   :  { %306 = vst [vmem:[#allocation11] sm:$0xff] %v300_v46  ;;  %v303_v49 = vadd.f32 %v333_v44, %v302_v48  ;;  %v364_v50 = vpop.f32.mrb[3].mxu1 }
 0x22d   :  { %307 = vst [vmem:[#allocation11 + $0x8] sm:$0xff] %v303_v49 }
 0x22e   :  { %312 = vsyncadd [#allocation4], 224  ;;  %s542_s4 = smov [#allocation11]  }
 0x22f   :  { %s313_s28 = sshll.u32 %s542_s4, 4  ;;  %s314_s28 = int_to_ptr.vmem [resolvable:$true] %s313_s28 }
 0x230   :  { %s500_s29 = scalar_lea.vmem %s314_s28, 32  ;;  %s504_s6 = scalar_lea.vmem %s314_s28, 256 }
 0x231   :  { %p501_p12 = scmp.ne.s32.totalorder %s314_s28, %s500_s29  ;;  %p505_p13 = scmp.lt.s32.totalorder %s314_s28, %s314_s28 }
 0x232   :  { %p506_p0 = scmp.lt.s32.totalorder %s504_s6, %s500_s29 }
 0x234   :  { %p507_p1 = por %p506_p0, %p505_p13 }
 0x236   :  { %p508_p2 = pnand %p507_p1, %p501_p12 }
 0x238   :  { %511 = shalt.err (!%p508_p2)
}
 0x239   :  { %s512_s9 = scalar_lea.hbm %s652_s5, 32 }
 0x23a   :  { %p513_p3 = scmp.ne.s32.totalorder %s652_s5, %s512_s9  ;;  %p516_p4 = scmp.lt.u32.totalorder %s512_s9, %s652_s5 }
 0x23c   :  { %p518_p5 = pnand %p516_p4, %p513_p3 }
 0x23e   :  { %521 = shalt.err (!%p518_p5)
}
 0x23f   :  { %s543_s15 = smov 32   ;;  %s544_s16 = smov 2  }
 0x240   :  { %319 = dma.vmem_to_hbm [thread:$0]  %s314_s28, 32, %s652_s5, [#allocation4], %s543_s15, %s543_s15, %s544_s16  }
 0x241   :  { %528 = dma.done.wait [#allocation4], 256  }
 0x242   :  { %529 = vsyncadd [#allocation4], 4294967040 }
 0x243   :  { %323 = vsyncpa [#allocation3], 1 }
 0x244   :  { %324 = vsyncpa [#allocation6], 1 }
 0x245   :  { %325 = vsyncpa [#allocation9], 1 }
 0x246   :  { %326 = vsyncpa [#allocation4], 1 }

</bundles_post_ra>
